<compile_context>
chip_gen: v7x
topology: tpu7x:2x2x1
jax: 0.10.0
libtpu: 0.0.40
codegen_flags: <defaults>
</compile_context>

<pallas_src>
import math

import jax
import jax.numpy as jnp
from jax.experimental import pallas as pl
from jax.experimental.pallas import tpu as pltpu


def build_pe_table(d_model: int, max_len: int = 5000) -> jnp.ndarray:
    """Sinusoidal positional-encoding table, shape (max_len, d_model), f32."""
    position = jnp.arange(0, max_len, dtype=jnp.float32)[:, None]           # (max_len, 1)
    div_term = jnp.exp(
        jnp.arange(0, d_model, 2, dtype=jnp.float32) * (-math.log(10000.0) / d_model)
    )                                                                        # (ceil(d/2),)
    angles = position * div_term                                             # (max_len, ceil(d/2))
    pe = jnp.zeros((max_len, d_model), dtype=jnp.float32)
    pe = pe.at[:, 0::2].set(jnp.sin(angles))
    pe = pe.at[:, 1::2].set(jnp.cos(angles)[:, : d_model // 2])
    return pe


def _add_pe_kernel(x_ref, pe_ref, o_ref):
    # x_ref / o_ref: (bs, bb, d_model) tiles; pe_ref: (bs, 1, d_model) tile.
    # Broadcast of pe over the batch axis happens here (free VPU/sublane work),
    # so pe is never batch-tiled in HBM.  Add in f32, cast on the store.
    # NOTE: for bf16 x, PyTorch's bf16+f32 promotion would yield an f32 output;
    # here the output keeps x's dtype (documented deviation, last-ulp only).
    o_ref[...] = (x_ref[...].astype(jnp.float32) + pe_ref[...]).astype(o_ref.dtype)


def positional_encoding_forward(x: jnp.ndarray, pe: jnp.ndarray,
                                *, tile_budget_bytes: int = 2 << 20) -> jnp.ndarray:
    """x: (seq_len, batch, d_model); pe: (max_len, d_model). Returns x + pe[:seq_len]."""
    seq_len, batch, d_model = x.shape
    # TODO(synk): seq_len > max_len is unguarded, same as the PyTorch original.

    # Tiny (seq_len, 1, d_model) slice of the table; traffic is seq_len*d_model*4
    # bytes, negligible vs. the x/out streams.
    pe3 = pe[:seq_len].astype(jnp.float32).reshape(seq_len, 1, d_model)

    itemsize = jnp.dtype(x.dtype).itemsize

    # ---- tile sizes from a byte budget (not a fixed 512) -------------------
    # Batch tile: keep full batch unless one seq row blows the budget; a batch
    # tile must be a multiple of 8 (sublane constraint on the 2nd-to-last dim)
    # or equal to the full batch extent.
    row_bytes = batch * d_model * itemsize
    if row_bytes <= tile_budget_bytes or batch < 16:
        bb = batch
    else:
        bb = max(8, (tile_budget_bytes // (d_model * itemsize)) // 8 * 8)
        bb = min(bb, batch)
        if batch % bb != 0:
            # TODO(synk): ragged batch tiling skipped; fall back to full batch.
            bb = batch

    # Seq tile: fill the remaining budget, cap at 512 rows (beyond ~512 rows
    # the HBM-roofline gain is <1%), never more than seq_len.
    bs = max(1, tile_budget_bytes // max(1, bb * d_model * itemsize))
    bs = min(bs, 512, seq_len)
    # Guarantee >=2 blocks along the parallel seq axis when possible so both
    # v7x TensorCores get work and the pipeline can overlap DMA with compute.
    if bs >= seq_len and seq_len > 1:
        bs = pl.cdiv(seq_len, 2)

    grid = (pl.cdiv(seq_len, bs), pl.cdiv(batch, bb))  # seq outer, batch inner

    out = pl.pallas_call(
        _add_pe_kernel,
        out_shape=jax.ShapeDtypeStruct((seq_len, batch, d_model), x.dtype),
        grid=grid,
        in_specs=[
            pl.BlockSpec((bs, bb, d_model), lambda i, j: (i, j, 0)),
            # pe depends only on the outer seq index -> its block is not
            # re-fetched across inner batch steps.
            pl.BlockSpec((bs, 1, d_model), lambda i, j: (i, 0, 0)),
        ],
        out_specs=pl.BlockSpec((bs, bb, d_model), lambda i, j: (i, j, 0)),
        # Output has identical shape/dtype/blocking to x -> donate x's buffer.
        input_output_aliases={0: 0},
        compiler_params=pltpu.CompilerParams(
            dimension_semantics=("parallel", "parallel"),
            # ~2 MiB x-tile double-buffered for 2 inputs + 1 output stays well
            # under this; explicit limit with headroom, safe on v5e/v6e/v7x.
            vmem_limit_bytes=32 << 20,
        ),
    )(x, pe3)

    return out


if __name__ == "__main__":
    d_model = 32
    max_len = 64          # small max_len; semantics identical to 5000 for seq_len <= max_len
    seq_len = 8
    batch = 2

    key = jax.random.PRNGKey(0)
    x = jax.random.normal(key, (seq_len, batch, d_model), dtype=jnp.float32)

    pe = build_pe_table(d_model, max_len)

    # Pure-JAX reference of the PyTorch forward, computed BEFORE the kernel
    # call since x's buffer may be donated to the kernel output.
    ref = x + pe[:seq_len][:, None, :]

    out = positional_encoding_forward(x, pe)
    out = jax.block_until_ready(out)

    assert out.shape == (seq_len, batch, d_model)
    assert jnp.allclose(out, ref, atol=1e-6, rtol=1e-6)

    print("KERNEL_OK")
</pallas_src>

<mosaic_0001>
module attributes {stable_mosaic.version = 11 : i64} {
  func.func @_add_pe_kernel(%arg0: i32, %arg1: i32, %arg2: memref<4x2x32xf32, #tpu.memory_space<vmem>>, %arg3: memref<4x1x32xf32, #tpu.memory_space<vmem>>, %arg4: memref<4x2x32xf32, #tpu.memory_space<vmem>>) attributes {dimension_semantics = [#tpu.dimension_semantics<parallel>, #tpu.dimension_semantics<parallel>], iteration_bounds = array<i64: 2, 1>, scalar_prefetch = 0 : i64, scratch_operands = 0 : i64, tpu.core_type = #tpu.core_type<tc>, window_params = [{transform_indices = @transform_0, window_bounds = array<i64: 4, 2, 32>}, {transform_indices = @transform_1, window_bounds = array<i64: 4, 1, 32>}, {transform_indices = @transform_2, window_bounds = array<i64: 4, 2, 32>}]} {
    %c0 = arith.constant 0 : index
    %c0_0 = arith.constant 0 : index
    %c0_1 = arith.constant 0 : index
    %0 = vector.load %arg2[%c0, %c0_0, %c0_1] : memref<4x2x32xf32, #tpu.memory_space<vmem>>, vector<4x2x32xf32>
    %c0_2 = arith.constant 0 : index
    %c0_3 = arith.constant 0 : index
    %c0_4 = arith.constant 0 : index
    %1 = vector.load %arg3[%c0_2, %c0_3, %c0_4] : memref<4x1x32xf32, #tpu.memory_space<vmem>>, vector<4x1x32xf32>
    %2 = vector.broadcast %1 : vector<4x1x32xf32> to vector<4x2x32xf32>
    %3 = arith.addf %0, %2 : vector<4x2x32xf32>
    %c0_5 = arith.constant 0 : index
    %c0_6 = arith.constant 0 : index
    %c0_7 = arith.constant 0 : index
    %4 = vector.load %arg4[%c0_5, %c0_6, %c0_7] : memref<4x2x32xf32, #tpu.memory_space<vmem>>, vector<4x2x32xf32>
    tpu.vector_store %arg4[%c0_5, %c0_6, %c0_7], %3 {strides = array<i32>} : memref<4x2x32xf32, #tpu.memory_space<vmem>>, vector<4x2x32xf32>,
    return
  }
  func.func @transform_0(%arg0: i32, %arg1: i32) -> (i32, i32, i32) {
    %c0_i32 = arith.constant 0 : i32
    %c0_i32_0 = arith.constant 0 : i32
    return %arg0, %arg1, %c0_i32 : i32, i32, i32
  }
  func.func @transform_1(%arg0: i32, %arg1: i32) -> (i32, i32, i32) {
    %c0_i32 = arith.constant 0 : i32
    %c0_i32_0 = arith.constant 0 : i32
    %c0_i32_1 = arith.constant 0 : i32
    return %arg0, %c0_i32, %c0_i32_0 : i32, i32, i32
  }
  func.func @transform_2(%arg0: i32, %arg1: i32) -> (i32, i32, i32) {
    %c0_i32 = arith.constant 0 : i32
    %c0_i32_0 = arith.constant 0 : i32
    return %arg0, %arg1, %c0_i32 : i32, i32, i32
  }
}

</mosaic_0001>

<bundles_post_ra>
// kernel: tpu_custom_call.1
= control target key start
LH: loop header
LB: loop body
LE: loop exit
PB: predicated region body
PF: predicated region fallthrough
CT: control target
= control target key end

     0   :  { %7 = vsyncpa [#allocation3], 0  ;;  %s756_s0 = inlined_call_operand.hbm [shape: f32[8,2,32], index: 0, kind: input, shape index: {}, may-alias: {0,2}]   ;;  %s757_s1 = inlined_call_operand.vmem [shape: f32[8,1,32], index: 1, kind: input, shape index: {}]   ;;  %s758_s2 = inlined_call_operand.hbm [shape: f32[8,2,32], index: 2, kind: output, shape index: {}, may-alias: {0,2}]  }
   0x1   :  { %9 = vsyncpa [#allocation3 + $0x1], 0 }
   0x2   :  { %10 = vsyncpa [#allocation4], 0 }
   0x3   :  { %12 = vsyncpa [#allocation4 + $0x1], 0  ;;  %s573_s9 = smov 0   ;;  %s575_s10 = smov 0  }
   0x4   :  { %s577_s11 = smov 0   ;;  %s579_s12 = smov 0  }
   0x5   :  { %s581_s13 = smov 0   ;;  %s583_s14 = smov 0  }
   0x6 LB: > { %s350_s15 = sadd.s32 4294967295, %s550_s14   ;;  %s351_s16 = sadd.s32 4294967294, %s550_s14   ;;  %s550_s14 = sphi %s583_s14, %s18_s14   ;;  %s546_s13 = sphi %s581_s13, %s773_s13   ;;  %s542_s12 = sphi %s579_s12, %s772_s12   ;;  %s538_s11 = sphi %s577_s11, %s771_s11   ;;  %s534_s10 = sphi %s575_s10, %s770_s10   ;;  %s530_s9 = sphi %s573_s9, %s769_s9  }
   0x7   : > { %s30_s17 = sadd.s32 1, %s546_s13  ;;  %s39_s18 = sadd.s32 1, %s538_s11 }
   0x8   : > { %p32_p0 = scmp.ge.s32.totalorder %s30_s17, 2  ;;  %p46_p1 = scmp.ne.s32.totalorder %s538_s11, %s534_s10 }
   0x9   : > { %p47_p2 = scmp.eq.s32.totalorder %s550_s14, 0  ;;  %p52_p3 = scmp.ne.s32.totalorder %s534_s10, %s530_s9 }
   0xa   : > { %s775_s17 = smov (%p32_p0, %s30_s17), 0  ;;  %p53_p5 = scmp.eq.s32.totalorder %s350_s15, 0 }
   0xb   : > { %p614_p4 = por %p47_p2, %p46_p1  ;;  %s34_s20 = ssub.s32 %s546_s13, %s775_s17 }
   0xc   : > { %p104_p6 = scmp.eq.s32.totalorder %s350_s15, 1  ;;  %p37_p7 = scmp.eq.s32.totalorder %s34_s20, 0 }
   0xd   : > { %p620_p8 = por %p53_p5, %p52_p3  ;;  %p110_p10 = scmp.eq.s32.totalorder %s351_s16, 1 }
   0xe   : > { %p624_p9 = por %p104_p6, %p46_p1  ;;  %p384_p13 = scmp.lt.s32.totalorder %s550_s14, 2 }
   0xf   : > { %s629_s23 = scalar_select %p37_p7, %s538_s11, %s39_s18  }
  0x10   : > { %s762_s22 = scalar_select %p624_p9, 1, 0 }
  0x11   : > { %p631_p11 = por %p110_p10, %p52_p3  ;;  %s130_s25 = sand.u32 1, %s538_s11  }
  0x12   : > { %s354_s26 = sshll.u32 %s130_s25, 3  ;;  %s370_s27 = sshll.u32 %s546_s13, 7 }
  0x13   : > { %s763_s24 = scalar_select %p631_p11, 1, 0 }
  0x14   : > { %s642_s30 = scalar_lea.hbm %s756_s0, %s370_s27  ;;  %s134_s3 = scalar_lea.vmem [#allocation2], %s354_s26 }
  0x15   : > { %s142_s4 = sshll.u32 %s134_s3, 4  ;;  %p648_p0 = pnand %p384_p13, %p614_p4  ;;  %s644_s4 = int_to_ptr.vmem [resolvable:$true] %s142_s4 }
  0x16   : > { %s653_s6 = scalar_lea.sflag [#allocation3], %s130_s25  ;;  %s438_s7 = scalar_lea.hbm %s642_s30, 128 }
  0x17   : > { %p439_p2 = scmp.ne.s32.totalorder %s642_s30, %s438_s7  ;;  %p440_p3 = pneg %p648_p0 }
  0x18   : > { %s443_s16 = scalar_lea.hbm %s756_s0, 256  ;;  %p444_p4 = scmp.lt.u32.totalorder %s642_s30, %s756_s0 }
  0x19   : > { %p441_p5 = pnand %p440_p3, %p439_p2  ;;  %p445_p7 = scmp.lt.u32.totalorder %s443_s16, %s438_s7 }
  0x1a   : > { %p447_p13 = scmp.lt.u32.totalorder %s438_s7, %s642_s30 }
  0x1b   : > { %p442_p6 = pneg %p441_p5  ;;  %p446_p10 = por %p445_p7, %p444_p4 }
  0x1d   : > { %p448_p12 = por %p447_p13, %p446_p10 }
  0x1f   : > { %p449_p1 = pnand %p448_p12, %p442_p6 }
  0x21   : > { %452 = shalt.err (!%p449_p1)
}
  0x22   : > { %s453_s20 = scalar_lea.vmem %s644_s4, 128  ;;  %s552_s25 = smov [#allocation2]  }
  0x23   : > { %p454_p2 = scmp.ne.s32.totalorder %s644_s4, %s453_s20  ;;  %s458_s26 = sshll.u32 %s552_s25, 4  ;;  %s459_s26 = int_to_ptr.vmem [resolvable:$false] %s458_s26 }
  0x24   : > { %s460_s27 = scalar_lea.vmem %s459_s26, 256  ;;  %p461_p9 = scmp.lt.s32.totalorder %s644_s4, %s459_s26 }
  0x25   : > { %p456_p5 = pnand %p454_p2, %p440_p3  ;;  %p462_p4 = scmp.lt.s32.totalorder %s460_s27, %s453_s20 }
  0x27   : > { %p457_p11 = pneg %p456_p5  ;;  %p463_p7 = por %p462_p4, %p461_p9 }
  0x29   : > { %p464_p10 = pnand %p463_p7, %p457_p11 }
  0x2b   : > { %467 = shalt.err (!%p464_p10)
}
  0x2c   : > { %s553_s28 = smov 32   ;;  %s554_s29 = smov 2  }
  0x2d   : > { %379 = dma.hbm_to_vmem [thread:$0]  (!%p648_p0), %s642_s30, 128, %s644_s4, %s653_s6, %s553_s28, %s553_s28, %s554_s29  }
  0x2e   : > { %p158_p12 = scmp.lt.s32.totalorder %s550_s14, 3  ;;  %p765_p1 = scmp.ge.s32.totalorder %s550_s14, 1 }
  0x30   : > { %p159_p3 = pnand %p765_p1, %p158_p12 }
  0x31   : > { %s685_s3 = sand.u32 (!%p159_p3), 1, %s534_s10  }
  0x32   : > { %162 = sbr.rel (%p159_p3) target bundleno = 87 (0x57), region = 28  ;;  %s358_s7 = sshll.u32 (!%p159_p3), %s685_s3, 3 }
  0x33   : > { %s165_s8 = scalar_lea.sflag (!%p159_p3), [#allocation3], %s685_s3  ;;  %s168_s15 = scalar_lea.vmem (!%p159_p3), [#allocation2], %s358_s7 }
  0x39   : > { %521 = dma.done.wait (%p620_p8), %s165_s8, 128  }
  0x3a   : > { %523 = vsyncadd (%p620_p8), %s165_s8, 4294967168  ;;  %s360_s30 = sshll.u32 %s542_s12, 2  ;;  %s192_s16 = scalar_lea.vmem [#allocation5], %s358_s7  ;;  %vm236_vm0 = vcmask 254976   ;;  %v200_v0 = vld [vmem:[%s168_s15] sm:$0x3] }
  0x3b   : > { %p195_p9 = scmp.lt.s32.totalorder %s360_s30, 7  ;;  %s256_s18 = sshll.u32 %s192_s16, 4  ;;  %v201_v2 = vld [vmem:[%s168_s15 + $0x2] sm:$0x3]  ;;  %v202_v5 = vld [vmem:[%s168_s15 + $0x4] sm:$0x3]  ;;  %s698_s18 = int_to_ptr.vmem [resolvable:$true] %s256_s18 }
  0x3c   : > { %s371_s19 = sshll.u32 %s542_s12, 7  ;;  %v203_v9 = vld [vmem:[%s168_s15 + $0x6] sm:$0x3]  ;;  %s242_s25 = scalar_lea.sflag [#allocation4], %s685_s3 }
  0x3d   : > { %s777_s30 = smov (!%p195_p9, %s360_s30), 7  ;;  %s704_s20 = scalar_lea.hbm %s758_s2, %s371_s19 }
  0x3e   : > { %s197_s6 = scalar_lea.vmem %s757_s1, %s777_s30  ;;  %s468_s26 = scalar_lea.vmem %s698_s18, 128 }
  0x3f   : > { %v361_v1 = vld [vmem:[%s197_s6] ss:$0 sm:$0xff]  ;;  %v362_v4 = vld [vmem:[%s197_s6 + $0x1] ss:$0 sm:$0xff]  ;;  %v363_v6 = vld [vmem:[%s197_s6 + $0x2] ss:$0 sm:$0xff]  ;;  %p469_p8 = scmp.ne.s32.totalorder %s698_s18, %s468_s26 }
  0x40   : > { %v232_v3 = vadd.f32 %v361_v1, %v200_v0  ;;  %v233_v7 = vadd.f32 %v362_v4, %v201_v2  ;;  %v234_v8 = vadd.f32 %v363_v6, %v202_v5  ;;  %v364_v10 = vld [vmem:[%s197_s6 + $0x3] ss:$0 sm:$0xff]  ;;  %p766_p11 = scmp.ne.s32.totalorder %s762_s22, 0  ;;  %s555_s27 = smov [#allocation5]  }
  0x41   : > { %v235_v11 = vadd.f32 %v364_v10, %v203_v9  ;;  %s472_s28 = sshll.u32 %s555_s27, 4  ;;  %s473_s28 = int_to_ptr.vmem [resolvable:$false] %s472_s28 }
  0x42   : > { %237 = vst.msk [vmem:[%s192_s16] sm:$0x3] %vm236_vm0, %v232_v3  ;;  %238 = vst.msk [vmem:[%s192_s16 + $0x2] sm:$0x3] %vm236_vm0, %v233_v7  ;;  %p470_p0 = pnand %p469_p8, %p766_p11  ;;  %s474_s29 = scalar_lea.vmem %s473_s28, 256 }
  0x43   : > { %239 = vst.msk [vmem:[%s192_s16 + $0x4] sm:$0x3] %vm236_vm0, %v234_v8  ;;  %240 = vst.msk [vmem:[%s192_s16 + $0x6] sm:$0x3] %vm236_vm0, %v235_v11  ;;  %p475_p13 = scmp.lt.s32.totalorder %s698_s18, %s473_s28  ;;  %p476_p2 = scmp.lt.s32.totalorder %s474_s29, %s468_s26 }
  0x44   : > { %p471_p6 = pneg %p470_p0 }
  0x45   : > { %p477_p5 = por %p476_p2, %p475_p13 }
  0x47   : > { %p478_p4 = pnand %p477_p5, %p471_p6 }
  0x49   : > { %481 = shalt.err (!%p478_p4)
}
  0x4a   : > { %s482_s7 = scalar_lea.hbm %s704_s20, 128  ;;  %s486_s30 = scalar_lea.hbm %s758_s2, 256 }
  0x4b   : > { %p483_p7 = scmp.ne.s32.totalorder %s704_s20, %s482_s7  ;;  %p487_p1 = scmp.lt.u32.totalorder %s704_s20, %s758_s2 }
  0x4c   : > { %p488_p3 = scmp.lt.u32.totalorder %s486_s30, %s482_s7  ;;  %p490_p8 = scmp.lt.u32.totalorder %s482_s7, %s704_s20 }
  0x4d   : > { %p484_p10 = pnand %p483_p7, %p766_p11 }
  0x4e   : > { %p489_p9 = por %p488_p3, %p487_p1 }
  0x4f   : > { %p485_p12 = pneg %p484_p10 }
  0x50   : > { %p491_p0 = por %p490_p8, %p489_p9 }
  0x52   : > { %p492_p6 = pnand %p491_p0, %p485_p12 }
  0x54   : > { %495 = shalt.err (!%p492_p6)
}
  0x55   : > { %s556_s6 = smov 32   ;;  %s557_s16 = smov 2  }
  0x56   : > { %374 = dma.vmem_to_hbm [thread:$0]  (%p766_p11), %s698_s18, 128, %s704_s20, %s242_s25, %s556_s6, %s556_s6, %s557_s16  }
  0x57 PF: > { %s271_s19 = sand.u32 1, %s530_s9   ;;  %p767_p13 = scmp.ne.s32.totalorder %s763_s24, 0 }
  0x58   : > { %p768_p2 = scmp.ge.s32.totalorder %s550_s14, 2  ;;  %s272_s12 = scalar_lea.sflag [#allocation4], %s271_s19 }
  0x5a   : > { %p381_p5 = pnand %p768_p2, %p767_p13 }
  0x5c   : > { %525 = dma.done.wait (!%p381_p5), %s272_s12, 128  }
  0x5d   : > { %527 = vsyncadd (!%p381_p5), %s272_s12, 4294967168  ;;  %s18_s14 = sadd.s32 1, %s550_s14   ;;  %s769_s9 = smov %s534_s10 }
  0x5e   : > { %p15_p4 = scmp.ge.s32.totalorder %s18_s14, 4   ;;  %s770_s10 = smov %s538_s11 }
  0x5f   : > { %s771_s11 = smov %s629_s23  ;;  %s772_s12 = smov %s546_s13 }
  0x60   : > { %s773_s13 = smov %s775_s17  ;;  %17 = sbr.rel (!%p15_p4) target bundleno = 6 (0x6), region = 76 }
  0x67   :  { %277 = vsyncpa [#allocation3], 1 }
  0x68   :  { %279 = vsyncpa [#allocation3 + $0x1], 1 }
  0x69   :  { %280 = vsyncpa [#allocation4], 1 }
  0x6a   :  { %282 = vsyncpa [#allocation4 + $0x1], 1 }

</bundles_post_ra>
